<compile_context>
chip_gen: v5e
topology: v5e:2x2
jax: 0.10.0
libtpu: 0.0.40
codegen_flags: <defaults>
</compile_context>

<pallas_src>
import jax
import jax.numpy as jnp
from jax.experimental import pallas as pl
from jax.experimental.pallas import tpu as pltpu

LANE = 128
SUBLANE = 8


def _round_up(n, m):
    return ((n + m - 1) // m) * m


def _tensorcores_per_chip():
    """Best-effort TensorCore count behind one JAX device.

    v7x (and megacore v4/v5p) expose 2 TCs per device; v5e/v6e expose 1.
    Used only to decide how many parallel batch tiles to emit."""
    try:
        kind = jax.devices()[0].device_kind.lower()
    except Exception:
        return 1
    for tag in ("v7", "v5p", "v4"):
        if tag in kind:
            return 2
    return 1


def mlp_kernel(x_ref, w1_ref, b1_ref, w2_ref, b2_ref, o_ref):
    # hidden = relu(x @ W1 + b1); MXU accumulates in f32.
    h = jnp.dot(x_ref[...], w1_ref[...], preferred_element_type=jnp.float32)
    h = jnp.maximum(h + b1_ref[...], 0.0)
    # Only cast if weights are narrower (keeps the all-f32 path cast-free).
    if h.dtype != w2_ref.dtype:
        h = h.astype(w2_ref.dtype)
    # out = hidden @ W2 + b2
    y = jnp.dot(h, w2_ref[...], preferred_element_type=jnp.float32)
    y = y + b2_ref[...]
    o_ref[...] = y.astype(o_ref.dtype)


def prepare_params(w1_pt, b1, w2_pt, b2):
    """One-time (init-path) prep: transpose PyTorch (out,in) weights to (in,out)
    and zero-pad the hidden dim to a lane multiple. Exact: padded hidden
    columns are relu(0+0)=0 and hit zero rows of W2, contributing nothing."""
    w1 = w1_pt.T  # (D_in, H)
    w2 = w2_pt.T  # (H, D_out)
    H = w1.shape[1]
    H_p = _round_up(H, LANE)
    w1p = jnp.pad(w1, ((0, 0), (0, H_p - H)))
    b1p = jnp.pad(b1, (0, H_p - H)).reshape(1, H_p)
    w2p = jnp.pad(w2, ((0, H_p - H), (0, 0)))
    b2p = b2.reshape(1, -1)
    return w1p, b1p, w2p, b2p


def mlp_forward(x, w1p, b1p, w2p, b2p, *, max_tile=1024):
    """x: (B, D_in) f32; params from prepare_params()."""
    B, D_in = x.shape
    H_p = w1p.shape[1]
    D_out = w2p.shape[1]

    # Batch tiling: >= num_TCs tiles so a dual-TC chip uses both cores,
    # tiles capped at max_tile rows for HBM-pipelining at large B,
    # and a single step on 1-TC chips when the whole batch fits one tile.
    cores = _tensorcores_per_chip()
    B8 = _round_up(B, SUBLANE)
    num_tiles = max(cores, pl.cdiv(B8, max_tile))
    tb = _round_up(pl.cdiv(B8, num_tiles), SUBLANE)
    num_tiles = pl.cdiv(B8, tb)
    B_p = num_tiles * tb

    xp = x if B_p == B else jnp.pad(x, ((0, B_p - B), (0, 0)))

    out_p = pl.pallas_call(
        mlp_kernel,
        out_shape=jax.ShapeDtypeStruct((B_p, D_out), x.dtype),
        grid_spec=pl.GridSpec(
            grid=(num_tiles,),
            in_specs=[
                # x streamed per batch tile; full (unpadded) feature dim.
                pl.BlockSpec((tb, D_in), lambda i: (i, 0)),
                # Weights/biases: constant index_map -> VMEM-resident.
                pl.BlockSpec((D_in, H_p), lambda i: (0, 0)),
                pl.BlockSpec((1, H_p), lambda i: (0, 0)),
                pl.BlockSpec((H_p, D_out), lambda i: (0, 0)),
                pl.BlockSpec((1, D_out), lambda i: (0, 0)),
            ],
            # Output at its real width (no 128-lane padding, no trailing slice).
            out_specs=pl.BlockSpec((tb, D_out), lambda i: (i, 0)),
        ),
        compiler_params=pltpu.CompilerParams(
            dimension_semantics=("parallel",)),
    )(xp, w1p, b1p, w2p, b2p)

    # Padded batch rows (if any) compute relu(b1)@W2+b2; drop them.
    return out_p if B_p == B else out_p[:B]


def reference_forward(x, w1, b1, w2, b2):
    h = jnp.maximum(x @ w1 + b1, 0.0)
    return h @ w2 + b2


if __name__ == "__main__":
    # Simple tabular DNN shapes; batch sized so a dual-TC chip gets 2 tiles.
    batch = 256
    input_size = 32
    hidden_size = 64
    output_size = 16

    key = jax.random.PRNGKey(0)
    kx, kw1, kb1, kw2, kb2 = jax.random.split(key, 5)

    x = jax.random.normal(kx, (batch, input_size), dtype=jnp.float32)

    # PyTorch nn.Linear stores (out, in).
    w1_pt = jax.random.normal(kw1, (hidden_size, input_size), jnp.float32) * 0.1
    b1 = jax.random.normal(kb1, (hidden_size,), jnp.float32) * 0.1
    w2_pt = jax.random.normal(kw2, (output_size, hidden_size), jnp.float32) * 0.1
    b2 = jax.random.normal(kb2, (output_size,), jnp.float32) * 0.1

    # One-time param prep (transpose + hidden-dim pad) hoisted out of the hot path.
    w1p, b1p, w2p, b2p = prepare_params(w1_pt, b1, w2_pt, b2)

    out = mlp_forward(x, w1p, b1p, w2p, b2p)
    out = jax.block_until_ready(out)

    ref = reference_forward(x, w1_pt.T, b1, w2_pt.T, b2)
    assert out.shape == (batch, output_size)
    assert jnp.allclose(out, ref, atol=1e-5, rtol=1e-5), "mismatch vs reference"

    print("KERNEL_OK")
</pallas_src>

<mosaic_0001>
module attributes {stable_mosaic.version = 11 : i64} {
  func.func @mlp_kernel(%arg0: i32, %arg1: memref<256x32xf32, #tpu.memory_space<vmem>>, %arg2: memref<32x128xf32, #tpu.memory_space<vmem>>, %arg3: memref<1x128xf32, #tpu.memory_space<vmem>>, %arg4: memref<128x16xf32, #tpu.memory_space<vmem>>, %arg5: memref<1x16xf32, #tpu.memory_space<vmem>>, %arg6: memref<256x16xf32, #tpu.memory_space<vmem>>) attributes {dimension_semantics = [#tpu.dimension_semantics<parallel>], iteration_bounds = array<i64: 1>, scalar_prefetch = 0 : i64, scratch_operands = 0 : i64, tpu.core_type = #tpu.core_type<tc>, window_params = [{transform_indices = @transform_0, window_bounds = array<i64: 256, 32>}, {pipeline_mode = #tpu.pipeline_mode<synchronous>, transform_indices = @transform_1, window_bounds = array<i64: 32, 128>}, {pipeline_mode = #tpu.pipeline_mode<synchronous>, transform_indices = @transform_2, window_bounds = array<i64: 1, 128>}, {pipeline_mode = #tpu.pipeline_mode<synchronous>, transform_indices = @transform_3, window_bounds = array<i64: 128, 16>}, {pipeline_mode = #tpu.pipeline_mode<synchronous>, transform_indices = @transform_4, window_bounds = array<i64: 1, 16>}, {transform_indices = @transform_5, window_bounds = array<i64: 256, 16>}]} {
    %c0 = arith.constant 0 : index
    %c0_0 = arith.constant 0 : index
    %0 = vector.load %arg1[%c0, %c0_0] : memref<256x32xf32, #tpu.memory_space<vmem>>, vector<256x32xf32>
    %c0_1 = arith.constant 0 : index
    %c0_2 = arith.constant 0 : index
    %1 = vector.load %arg2[%c0_1, %c0_2] : memref<32x128xf32, #tpu.memory_space<vmem>>, vector<32x128xf32>
    %cst = arith.constant dense<0.000000e+00> : vector<256x128xf32>
    %2 = tpu.matmul %0, %1, %cst {dimension_numbers = #tpu.dot_dimension_numbers<[1], [0], [0], [1], [0, 0, 1, 1], [], []>} : vector<256x32xf32>, vector<32x128xf32>, vector<256x128xf32> -> vector<256x128xf32>
    %c0_3 = arith.constant 0 : index
    %c0_4 = arith.constant 0 : index
    %3 = vector.load %arg3[%c0_3, %c0_4] : memref<1x128xf32, #tpu.memory_space<vmem>>, vector<1x128xf32>
    %4 = vector.broadcast %3 : vector<1x128xf32> to vector<256x128xf32>
    %5 = arith.addf %2, %4 : vector<256x128xf32>
    %cst_5 = arith.constant 0.000000e+00 : f32
    %6 = vector.broadcast %cst_5 : f32 to vector<256x128xf32>
    %7 = arith.maximumf %5, %6 : vector<256x128xf32>
    %c0_6 = arith.constant 0 : index
    %c0_7 = arith.constant 0 : index
    %8 = vector.load %arg4[%c0_6, %c0_7] : memref<128x16xf32, #tpu.memory_space<vmem>>, vector<128x16xf32>
    %cst_8 = arith.constant dense<0.000000e+00> : vector<256x16xf32>
    %9 = tpu.matmul %7, %8, %cst_8 {dimension_numbers = #tpu.dot_dimension_numbers<[1], [0], [0], [1], [0, 0, 1, 1], [], []>} : vector<256x128xf32>, vector<128x16xf32>, vector<256x16xf32> -> vector<256x16xf32>
    %c0_9 = arith.constant 0 : index
    %c0_10 = arith.constant 0 : index
    %10 = vector.load %arg5[%c0_9, %c0_10] : memref<1x16xf32, #tpu.memory_space<vmem>>, vector<1x16xf32>
    %11 = vector.broadcast %10 : vector<1x16xf32> to vector<256x16xf32>
    %12 = arith.addf %9, %11 : vector<256x16xf32>
    %c0_11 = arith.constant 0 : index
    %c0_12 = arith.constant 0 : index
    %13 = vector.load %arg6[%c0_11, %c0_12] : memref<256x16xf32, #tpu.memory_space<vmem>>, vector<256x16xf32>
    tpu.vector_store %arg6[%c0_11, %c0_12], %12 {strides = array<i32>} : memref<256x16xf32, #tpu.memory_space<vmem>>, vector<256x16xf32>,
    return
  }
  func.func @transform_0(%arg0: i32) -> (i32, i32) {
    %c0_i32 = arith.constant 0 : i32
    %c0_i32_0 = arith.constant 0 : i32
    return %arg0, %c0_i32 : i32, i32
  }
  func.func @transform_1(%arg0: i32) -> (i32, i32) {
    %c0_i32 = arith.constant 0 : i32
    %c0_i32_0 = arith.constant 0 : i32
    %c0_i32_1 = arith.constant 0 : i32
    return %c0_i32, %c0_i32_0 : i32, i32
  }
  func.func @transform_2(%arg0: i32) -> (i32, i32) {
    %c0_i32 = arith.constant 0 : i32
    %c0_i32_0 = arith.constant 0 : i32
    %c0_i32_1 = arith.constant 0 : i32
    return %c0_i32, %c0_i32_0 : i32, i32
  }
  func.func @transform_3(%arg0: i32) -> (i32, i32) {
    %c0_i32 = arith.constant 0 : i32
    %c0_i32_0 = arith.constant 0 : i32
    %c0_i32_1 = arith.constant 0 : i32
    return %c0_i32, %c0_i32_0 : i32, i32
  }
  func.func @transform_4(%arg0: i32) -> (i32, i32) {
    %c0_i32 = arith.constant 0 : i32
    %c0_i32_0 = arith.constant 0 : i32
    %c0_i32_1 = arith.constant 0 : i32
    return %c0_i32, %c0_i32_0 : i32, i32
  }
  func.func @transform_5(%arg0: i32) -> (i32, i32) {
    %c0_i32 = arith.constant 0 : i32
    %c0_i32_0 = arith.constant 0 : i32
    return %arg0, %c0_i32 : i32, i32
  }
}

</mosaic_0001>

<bundles_post_ra>
// kernel: tpu_custom_call.1
= control target key start
LH: loop header
LB: loop body
LE: loop exit
PB: predicated region body
PF: predicated region fallthrough
CT: control target
= control target key end

     0   :  { %vm60_vm0 = vcmask 261120   ;;  %vm435_vm1 = vcmask 130048   ;;  %s962_s1 = inlined_call_operand.vmem [shape: f32[32,128], index: 1, kind: input, shape index: {}]   ;;  %s963_s0 = inlined_call_operand.vmem [shape: f32[256,32], index: 0, kind: input, shape index: {}]   ;;  %s964_s2 = inlined_call_operand.vmem [shape: f32[1,128], index: 2, kind: input, shape index: {}]   ;;  %s965_s3 = inlined_call_operand.vmem [shape: f32[128,16], index: 3, kind: input, shape index: {}]   ;;  %s966_s4 = inlined_call_operand.vmem [shape: f32[1,16], index: 4, kind: input, shape index: {}]   ;;  %s967_s5 = inlined_call_operand.vmem [shape: f32[256,16], index: 5, kind: output, shape index: {}]  }
   0x1   :  { %v55_v0 = vld [vmem:[%s962_s1 + $0x18] sm:$0xff]  ;;  %v54_v1 = vld [vmem:[%s962_s1 + $0x10] sm:$0xff]  ;;  %v53_v2 = vld [vmem:[%s962_s1 + $0x8] sm:$0xff] }
   0x2   :  { %169 = vmatpush.msra.mxu0 %v55_v0  ;;  %504 = vmatpush.msra.mxu3 %v55_v0  ;;  %v52_v3 = vld [vmem:[%s962_s1] sm:$0xff]  ;;  %v21_v5 = vld [vmem:[%s963_s0 + $0x8] sm:$0xff]  ;;  %v22_v6 = vld [vmem:[%s963_s0 + $0x10] sm:$0xff] }
   0x3   :  { %v20_v4 = vld [vmem:[%s963_s0] sm:$0xff]  ;;  %v23_v7 = vld [vmem:[%s963_s0 + $0x18] sm:$0xff]  ;;  %v25_v9 = vld [vmem:[%s963_s0 + $0x28] sm:$0xff] }
   0x4   :  { %170 = vmatpush.msra.mxu0 %v54_v1  ;;  %505 = vmatpush.msra.mxu3 %v54_v1  ;;  %v24_v8 = vld [vmem:[%s963_s0 + $0x20] sm:$0xff]  ;;  %v26_v10 = vld [vmem:[%s963_s0 + $0x30] sm:$0xff]  ;;  %v27_v11 = vld [vmem:[%s963_s0 + $0x38] sm:$0xff] }
   0x5   :  { %v28_v12 = vld [vmem:[%s963_s0 + $0x40] sm:$0xff]  ;;  %v317_v13 = vld [vmem:[%s965_s3 + $0x78] sm:$0xff]  ;;  %v316_v14 = vld [vmem:[%s965_s3 + $0x70] sm:$0xff] }
   0x6   :  { %171 = vmatpush.msra.mxu0 %v53_v2  ;;  %506 = vmatpush.msra.mxu3 %v53_v2  ;;  %v315_v15 = vld [vmem:[%s965_s3 + $0x68] sm:$0xff]  ;;  %v314_v17 = vld [vmem:[%s965_s3 + $0x60] sm:$0xff]  ;;  %v313_v18 = vld [vmem:[%s965_s3 + $0x58] sm:$0xff] }
   0x7   :  { %322 = vmatpush.msra.mxu1 %v317_v13  ;;  %508 = vmatpush.msra.mxu2 %v317_v13  ;;  %v29_v16 = vld [vmem:[%s963_s0 + $0x48] sm:$0xff]  ;;  %v312_v19 = vld [vmem:[%s965_s3 + $0x50] sm:$0xff]  ;;  %v310_v22 = vld [vmem:[%s965_s3 + $0x40] sm:$0xff] }
   0x8   :  { %172 = vmatpush.msra.mxu0 %v52_v3  ;;  %507 = vmatpush.msra.mxu3 %v52_v3  ;;  %v311_v20 = vld [vmem:[%s965_s3 + $0x48] sm:$0xff]  ;;  %v30_v21 = vld [vmem:[%s963_s0 + $0x50] sm:$0xff]  ;;  %v309_v23 = vld [vmem:[%s965_s3 + $0x38] sm:$0xff] }
   0x9   :  { %472 = vmatmul.msk.f32.vlgmr.msra.gmra.mxu0 %vm60_vm0, %v20_v4  ;;  %323 = vmatpush.msra.mxu1 %v316_v14  ;;  %v308_v24 = vld [vmem:[%s965_s3 + $0x30] sm:$0xff]  ;;  %v307_v25 = vld [vmem:[%s965_s3 + $0x28] sm:$0xff]  ;;  %v31_v26 = vld [vmem:[%s963_s0 + $0x58] sm:$0xff] }
   0xa   :  { %509 = vmatpush.msrb.mxu3 %v317_v13  ;;  %510 = vmatpush.msra.mxu2 %v316_v14  ;;  %v306_v27 = vld [vmem:[%s965_s3 + $0x20] sm:$0xff]  ;;  %v38_v28 = vld [vmem:[%s963_s0 + $0x90] sm:$0xff]  ;;  %v305_v29 = vld [vmem:[%s965_s3 + $0x18] sm:$0xff] }
   0xb   :  { %324 = vmatpush.msra.mxu1 %v315_v15  ;;  %490 = vmatmul.msk.f32.vlgmr.msra.gmra.mxu3 %vm60_vm0, %v38_v28  ;;  %v304_v30 = vld [vmem:[%s965_s3 + $0x10] sm:$0xff]  ;;  %v32_v31 = vld [vmem:[%s963_s0 + $0x60] sm:$0xff]  ;;  %v303_v32 = vld [vmem:[%s965_s3 + $0x8] sm:$0xff] }
   0xc   :  { %511 = vmatpush.msrb.mxu3 %v316_v14  ;;  %512 = vmatpush.msra.mxu2 %v315_v15  ;;  %v302_v33 = vld [vmem:[%s965_s3] sm:$0xff]  ;;  %v39_v34 = vld [vmem:[%s963_s0 + $0x98] sm:$0xff]  ;;  %v33_v35 = vld [vmem:[%s963_s0 + $0x68] sm:$0xff] }
   0xd   :  { %325 = vmatpush.msra.mxu1 %v314_v17  ;;  %v40_v36 = vld [vmem:[%s963_s0 + $0xa0] sm:$0xff]  ;;  %v34_v37 = vld [vmem:[%s963_s0 + $0x70] sm:$0xff]  ;;  %v41_v38 = vld [vmem:[%s963_s0 + $0xa8] sm:$0xff] }
   0xe   :  { %513 = vmatpush.msrb.mxu3 %v315_v15  ;;  %514 = vmatpush.msra.mxu2 %v314_v17  ;;  %v35_v39 = vld [vmem:[%s963_s0 + $0x78] sm:$0xff]  ;;  %v42_v40 = vld [vmem:[%s963_s0 + $0xb0] sm:$0xff]  ;;  %v719_v41 = vld [vmem:[%s964_s2] ss:$0 sm:$0xff] }
   0xf   :  { %326 = vmatpush.msra.mxu1 %v313_v18  ;;  %v36_v43 = vld [vmem:[%s963_s0 + $0x80] sm:$0xff]  ;;  %v43_v46 = vld [vmem:[%s963_s0 + $0xb8] sm:$0xff]  ;;  %v37_v48 = vld [vmem:[%s963_s0 + $0x88] sm:$0xff] }
  0x10   :  { %515 = vmatpush.msrb.mxu3 %v314_v17  ;;  %516 = vmatpush.msra.mxu2 %v313_v18  ;;  %v44_v51 = vld [vmem:[%s963_s0 + $0xc0] sm:$0xff]  ;;  %v45_v55 = vld [vmem:[%s963_s0 + $0xc8] sm:$0xff]  ;;  %v46_v59 = vld [vmem:[%s963_s0 + $0xd0] sm:$0xff] }
  0x11   :  { %473 = vmatmul.msk.f32.gmra.mxu0 %vm60_vm0, %v21_v5  ;;  %327 = vmatpush.msra.mxu1 %v312_v19  ;;  %v47_v63 = vld [vmem:[%s963_s0 + $0xd8] sm:$0xff]  ;;  %v48_v3 = vld [vmem:[%s963_s0 + $0xe0] sm:$0xff] }
  0x12   :  { %517 = vmatpush.msrb.mxu3 %v313_v18  ;;  %518 = vmatpush.msra.mxu2 %v312_v19  ;;  %v51_v15 = vld [vmem:[%s963_s0 + $0xf8] sm:$0xff] }
  0x13   :  { %328 = vmatpush.msra.mxu1 %v311_v20  ;;  %491 = vmatmul.msk.f32.gmra.mxu3 %vm60_vm0, %v39_v34 }
  0x14   :  { %519 = vmatpush.msrb.mxu3 %v312_v19  ;;  %520 = vmatpush.msra.mxu2 %v311_v20 }
  0x15   :  { %329 = vmatpush.msra.mxu1 %v310_v22 }
  0x16   :  { %521 = vmatpush.msrb.mxu3 %v311_v20  ;;  %522 = vmatpush.msra.mxu2 %v310_v22 }
  0x17   :  { %330 = vmatpush.msra.mxu1 %v309_v23 }
  0x18   :  { %523 = vmatpush.msrb.mxu3 %v310_v22  ;;  %524 = vmatpush.msra.mxu2 %v309_v23 }
  0x19   :  { %474 = vmatmul.msk.f32.gmra.mxu0 %vm60_vm0, %v22_v6  ;;  %331 = vmatpush.msra.mxu1 %v308_v24 }
  0x1a   :  { %525 = vmatpush.msrb.mxu3 %v309_v23  ;;  %526 = vmatpush.msra.mxu2 %v308_v24 }
  0x1b   :  { %332 = vmatpush.msra.mxu1 %v307_v25  ;;  %492 = vmatmul.msk.f32.gmra.mxu3 %vm60_vm0, %v40_v36 }
  0x1c   :  { %527 = vmatpush.msrb.mxu3 %v308_v24  ;;  %528 = vmatpush.msra.mxu2 %v307_v25 }
  0x1d   :  { %333 = vmatpush.msra.mxu1 %v306_v27 }
  0x1e   :  { %529 = vmatpush.msrb.mxu3 %v307_v25  ;;  %530 = vmatpush.msra.mxu2 %v306_v27 }
  0x1f   :  { %334 = vmatpush.msra.mxu1 %v305_v29 }
  0x20   :  { %531 = vmatpush.msrb.mxu3 %v306_v27  ;;  %532 = vmatpush.msra.mxu2 %v305_v29 }
  0x21   :  { %475 = vmatmul.msk.f32.gmra.mxu0 %vm60_vm0, %v23_v7  ;;  %335 = vmatpush.msra.mxu1 %v304_v30  ;;  %v49_v7 = vld [vmem:[%s963_s0 + $0xe8] sm:$0xff] }
  0x22   :  { %533 = vmatpush.msrb.mxu3 %v305_v29  ;;  %534 = vmatpush.msra.mxu2 %v304_v30 }
  0x23   :  { %336 = vmatpush.msra.mxu1 %v303_v32  ;;  %493 = vmatmul.msk.f32.gmra.mxu3 %vm60_vm0, %v41_v38 }
  0x24   :  { %535 = vmatpush.msrb.mxu3 %v304_v30  ;;  %536 = vmatpush.msra.mxu2 %v303_v32 }
  0x25   :  { %337 = vmatpush.msra.mxu1 %v302_v33 }
  0x26   :  { %538 = vmatpush.msra.mxu2 %v302_v33  ;;  %537 = vmatpush.msrb.mxu3 %v303_v32 }
  0x28   :  { %539 = vmatpush.msrb.mxu3 %v302_v33 }
  0x29   :  { %476 = vmatmul.msk.f32.gmra.mxu0 %vm60_vm0, %v24_v8 }
  0x2b   :  { %494 = vmatmul.msk.f32.gmra.mxu3 %vm60_vm0, %v42_v40 }
  0x31   :  { %477 = vmatmul.msk.f32.gmra.mxu0 %vm60_vm0, %v25_v9 }
  0x33   :  { %495 = vmatmul.msk.f32.gmra.mxu3 %vm60_vm0, %v43_v46 }
  0x39   :  { %478 = vmatmul.msk.f32.gmra.mxu0 %vm60_vm0, %v26_v10 }
  0x3b   :  { %496 = vmatmul.msk.f32.gmra.mxu3 %vm60_vm0, %v44_v51 }
  0x41   :  { %479 = vmatmul.msk.f32.gmra.mxu0 %vm60_vm0, %v27_v11  ;;  %v50_v11 = vld [vmem:[%s963_s0 + $0xf0] sm:$0xff] }
  0x43   :  { %497 = vmatmul.msk.f32.gmra.mxu3 %vm60_vm0, %v45_v55 }
  0x49   :  { %480 = vmatmul.msk.f32.gmra.mxu0 %vm60_vm0, %v28_v12 }
  0x4b   :  { %498 = vmatmul.msk.f32.gmra.mxu3 %vm60_vm0, %v46_v59 }
  0x51   :  { %481 = vmatmul.msk.f32.gmra.mxu0 %vm60_vm0, %v29_v16 }
  0x53   :  { %499 = vmatmul.msk.f32.gmra.mxu3 %vm60_vm0, %v47_v63 }
  0x59   :  { %482 = vmatmul.msk.f32.gmra.mxu0 %vm60_vm0, %v30_v21 }
  0x5b   :  { %500 = vmatmul.msk.f32.gmra.mxu3 %vm60_vm0, %v48_v3 }
  0x61   :  { %483 = vmatmul.msk.f32.gmra.mxu0 %vm60_vm0, %v31_v26 }
  0x63   :  { %501 = vmatmul.msk.f32.gmra.mxu3 %vm60_vm0, %v49_v7 }
  0x69   :  { %484 = vmatmul.msk.f32.gmra.mxu0 %vm60_vm0, %v32_v31 }
  0x6b   :  { %502 = vmatmul.msk.f32.gmra.mxu3 %vm60_vm0, %v50_v11 }
  0x71   :  { %485 = vmatmul.msk.f32.gmra.mxu0 %vm60_vm0, %v33_v35 }
  0x73   :  { %503 = vmatmul.msk.f32.gmra.mxu3 %vm60_vm0, %v51_v15 }
  0x79   :  { %486 = vmatmul.msk.f32.gmra.mxu0 %vm60_vm0, %v34_v37 }
  0x81   :  { %487 = vmatmul.msk.f32.gmra.mxu0 %vm60_vm0, %v35_v39 }
  0x86   :  { %v174_v42 = vpop.f32.mrf.mxu0 }
  0x87   :  { %v175_v44 = vadd.f32 %v719_v41, %v174_v42  ;;  %v784_v42 = vld [vmem:[%s966_s4] ss:$0 sm:$0xff] }
  0x89   :  { %v270_v45 = vmax.f32 %v175_v44, 0.0  ;;  %488 = vmatmul.msk.f32.gmra.mxu0 %vm60_vm0, %v36_v43 }
  0x8b   :  { %338 = vmatmul.f32.vlgmr.msra.gmra.mxu1 %v270_v45 }
  0x8e   :  { %v177_v47 = vpop.f32.mrf.mxu0  ;;  %v228_v26 = vpop.f32.mrf.mxu3 }
  0x8f   :  { %v178_v49 = vadd.f32 %v719_v41, %v177_v47  ;;  %v229_v55 = vadd.f32 %v719_v41, %v228_v26 }
  0x91   :  { %v271_v50 = vmax.f32 %v178_v49, 0.0  ;;  %489 = vmatmul.msk.f32.gmra.mxu0 %vm60_vm0, %v37_v48 }
  0x93   :  { %341 = vmatmul.f32.gmra.mxu1 %v271_v50 }
  0x96   :  { %v180_v52 = vpop.f32.mrf.mxu0  ;;  %v231_v30 = vpop.f32.mrf.mxu3 }
  0x97   :  { %v181_v53 = vadd.f32 %v719_v41, %v180_v52 }
  0x99   :  { %v272_v54 = vmax.f32 %v181_v53, 0.0 }
  0x9b   :  { %344 = vmatmul.f32.gmra.mxu1 %v272_v54 }
  0x9e   :  { %v183_v56 = vpop.f32.mrf.mxu0  ;;  %v234_v34 = vpop.f32.mrf.mxu3 }
  0x9f   :  { %v184_v57 = vadd.f32 %v719_v41, %v183_v56 }
  0xa1   :  { %v273_v58 = vmax.f32 %v184_v57, 0.0 }
  0xa3   :  { %347 = vmatmul.f32.gmra.mxu1 %v273_v58  ;;  %v288_v58 = vmax.f32 %v229_v55, 0.0 }
  0xa6   :  { %v186_v60 = vpop.f32.mrf.mxu0  ;;  %v237_v38 = vpop.f32.mrf.mxu3 }
  0xa7   :  { %v187_v61 = vadd.f32 %v719_v41, %v186_v60  ;;  %v232_v60 = vadd.f32 %v719_v41, %v231_v30 }
  0xa9   :  { %v274_v62 = vmax.f32 %v187_v61, 0.0  ;;  %v289_v63 = vmax.f32 %v232_v60, 0.0 }
  0xab   :  { %350 = vmatmul.f32.gmra.mxu1 %v274_v62 }
  0xae   :  { %v189_v0 = vpop.f32.mrf.mxu0  ;;  %v240_v44 = vpop.f32.mrf.mxu3 }
  0xaf   :  { %v190_v1 = vadd.f32 %v719_v41, %v189_v0  ;;  %v241_v11 = vadd.f32 %v719_v41, %v240_v44 }
  0xb1   :  { %v275_v2 = vmax.f32 %v190_v1, 0.0  ;;  %v235_v1 = vadd.f32 %v719_v41, %v234_v34 }
  0xb3   :  { %353 = vmatmul.f32.gmra.mxu1 %v275_v2 }
  0xb6   :  { %v192_v4 = vpop.f32.mrf.mxu0  ;;  %v243_v50 = vpop.f32.mrf.mxu3 }
  0xb7   :  { %v193_v5 = vadd.f32 %v719_v41, %v192_v4  ;;  %v290_v4 = vmax.f32 %v235_v1, 0.0 }
  0xb9   :  { %v276_v6 = vmax.f32 %v193_v5, 0.0 }
  0xbb   :  { %356 = vmatmul.f32.gmra.mxu1 %v276_v6  ;;  %v238_v6 = vadd.f32 %v719_v41, %v237_v38 }
  0xbe   :  { %v195_v8 = vpop.f32.mrf.mxu0  ;;  %v246_v56 = vpop.f32.mrf.mxu3 }
  0xbf   :  { %v196_v9 = vadd.f32 %v719_v41, %v195_v8 }
  0xc1   :  { %v277_v10 = vmax.f32 %v196_v9, 0.0  ;;  %v291_v9 = vmax.f32 %v238_v6, 0.0 }
  0xc3   :  { %359 = vmatmul.f32.gmra.mxu1 %v277_v10 }
  0xc6   :  { %v198_v12 = vpop.f32.mrf.mxu0  ;;  %v249_v61 = vpop.f32.mrf.mxu3 }
  0xc7   :  { %v199_v13 = vadd.f32 %v719_v41, %v198_v12 }
  0xc9   :  { %v278_v14 = vmax.f32 %v199_v13, 0.0 }
  0xcb   :  { %362 = vmatmul.f32.gmra.mxu1 %v278_v14  ;;  %v292_v14 = vmax.f32 %v241_v11, 0.0 }
  0xce   :  { %v201_v16 = vpop.f32.mrf.mxu0  ;;  %v252_v2 = vpop.f32.mrf.mxu3 }
  0xcf   :  { %v202_v17 = vadd.f32 %v719_v41, %v201_v16  ;;  %v244_v16 = vadd.f32 %v719_v41, %v243_v50 }
  0xd1   :  { %v279_v18 = vmax.f32 %v202_v17, 0.0 }
  0xd3   :  { %365 = vmatmul.f32.gmra.mxu1 %v279_v18 }
  0xd6   :  { %v204_v19 = vpop.f32.mrf.mxu0  ;;  %v255_v7 = vpop.f32.mrf.mxu3 }
  0xd7   :  { %v205_v20 = vadd.f32 %v719_v41, %v204_v19  ;;  %v293_v19 = vmax.f32 %v244_v16, 0.0 }
  0xd9   :  { %v280_v21 = vmax.f32 %v205_v20, 0.0 }
  0xdb   :  { %368 = vmatmul.f32.gmra.mxu1 %v280_v21  ;;  %v247_v21 = vadd.f32 %v719_v41, %v246_v56 }
  0xde   :  { %v207_v22 = vpop.f32.mrf.mxu0  ;;  %v258_v12 = vpop.f32.mrf.mxu3 }
  0xdf   :  { %v208_v23 = vadd.f32 %v719_v41, %v207_v22 }
  0xe1   :  { %v281_v24 = vmax.f32 %v208_v23, 0.0 }
  0xe3   :  { %371 = vmatmul.f32.gmra.mxu1 %v281_v24 }
  0xe6   :  { %v210_v25 = vpop.f32.mrf.mxu0  ;;  %v261_v17 = vpop.f32.mrf.mxu3 }
  0xe7   :  { %v211_v27 = vadd.f32 %v719_v41, %v210_v25  ;;  %v294_v25 = vmax.f32 %v247_v21, 0.0 }
  0xe9   :  { %v282_v28 = vmax.f32 %v211_v27, 0.0 }
  0xeb   :  { %374 = vmatmul.f32.gmra.mxu1 %v282_v28  ;;  %v250_v28 = vadd.f32 %v719_v41, %v249_v61 }
  0xee   :  { %v213_v29 = vpop.f32.mrf.mxu0  ;;  %v264_v22 = vpop.f32.mrf.mxu3 }
  0xef   :  { %v214_v31 = vadd.f32 %v719_v41, %v213_v29  ;;  %v265_v23 = vadd.f32 %v719_v41, %v264_v22 }
  0xf1   :  { %v283_v32 = vmax.f32 %v214_v31, 0.0  ;;  %v300_v27 = vmax.f32 %v265_v23, 0.0 }
  0xf3   :  { %377 = vmatmul.f32.gmra.mxu1 %v283_v32  ;;  %428 = vmatmul.f32.vlgmr.msrb.gmra.mxu3 %v300_v27  ;;  %v295_v32 = vmax.f32 %v250_v28, 0.0 }
  0xf6   :  { %v216_v33 = vpop.f32.mrf.mxu0  ;;  %v267_v29 = vpop.f32.mrf.mxu3 }
  0xf7   :  { %v217_v35 = vadd.f32 %v719_v41, %v216_v33  ;;  %v268_v30 = vadd.f32 %v719_v41, %v267_v29 }
  0xf9   :  { %v284_v36 = vmax.f32 %v217_v35, 0.0  ;;  %v301_v34 = vmax.f32 %v268_v30, 0.0  ;;  %v253_v35 = vadd.f32 %v719_v41, %v252_v2 }
  0xfb   :  { %380 = vmatmul.f32.gmra.mxu1 %v284_v36  ;;  %431 = vmatmul.f32.gmra.mxu3 %v301_v34 }
  0xfe   :  { %v219_v37 = vpop.f32.mrf.mxu0 }
  0xff   :  { %v220_v39 = vadd.f32 %v719_v41, %v219_v37  ;;  %v296_v37 = vmax.f32 %v253_v35, 0.0 }
 0x101   :  { %v285_v40 = vmax.f32 %v220_v39, 0.0  ;;  %v256_v39 = vadd.f32 %v719_v41, %v255_v7 }
 0x103   :  { %383 = vmatmul.f32.vlgmr.msra.gmra.mxu2 %v285_v40 }
 0x106   :  { %v222_v43 = vpop.f32.mrf.mxu0 }
 0x107   :  { %v223_v45 = vadd.f32 %v719_v41, %v222_v43  ;;  %v297_v43 = vmax.f32 %v256_v39, 0.0 }
 0x108   :  { %v339_v46 = vpop.f32.mrf.mxu1 }
 0x109   :  { %v286_v47 = vmax.f32 %v223_v45, 0.0  ;;  %v340_v48 = vadd.f32 %v784_v42, %v339_v46  ;;  %v259_v45 = vadd.f32 %v719_v41, %v258_v12 }
 0x10b   :  { %436 = vst.msk [vmem:[%s967_s5] sm:$0xff] %vm435_vm1, %v340_v48  ;;  %386 = vmatmul.f32.gmra.mxu2 %v286_v47  ;;  %v298_v47 = vmax.f32 %v259_v45, 0.0 }
 0x10e   :  { %v225_v49 = vpop.f32.mrf.mxu0 }
 0x10f   :  { %v226_v51 = vadd.f32 %v719_v41, %v225_v49  ;;  %v262_v49 = vadd.f32 %v719_v41, %v261_v17 }
 0x110   :  { %v342_v52 = vpop.f32.mrf.mxu1 }
 0x111   :  { %v287_v53 = vmax.f32 %v226_v51, 0.0  ;;  %v343_v54 = vadd.f32 %v784_v42, %v342_v52  ;;  %v299_v51 = vmax.f32 %v262_v49, 0.0 }
 0x113   :  { %437 = vst.msk [vmem:[%s967_s5 + $0x8] sm:$0xff] %vm435_vm1, %v343_v54  ;;  %389 = vmatmul.f32.gmra.mxu2 %v287_v53 }
 0x118   :  { %v345_v57 = vpop.f32.mrf.mxu1 }
 0x119   :  { %v346_v59 = vadd.f32 %v784_v42, %v345_v57 }
 0x11b   :  { %438 = vst.msk [vmem:[%s967_s5 + $0x10] sm:$0xff] %vm435_vm1, %v346_v59  ;;  %392 = vmatmul.f32.gmra.mxu2 %v288_v58 }
 0x120   :  { %v348_v62 = vpop.f32.mrf.mxu1 }
 0x121   :  { %v349_v0 = vadd.f32 %v784_v42, %v348_v62 }
 0x123   :  { %439 = vst.msk [vmem:[%s967_s5 + $0x18] sm:$0xff] %vm435_vm1, %v349_v0  ;;  %395 = vmatmul.f32.gmra.mxu2 %v289_v63 }
 0x128   :  { %v351_v3 = vpop.f32.mrf.mxu1 }
 0x129   :  { %v352_v5 = vadd.f32 %v784_v42, %v351_v3 }
 0x12b   :  { %440 = vst.msk [vmem:[%s967_s5 + $0x20] sm:$0xff] %vm435_vm1, %v352_v5  ;;  %398 = vmatmul.f32.gmra.mxu2 %v290_v4 }
 0x130   :  { %v354_v8 = vpop.f32.mrf.mxu1 }
 0x131   :  { %v355_v10 = vadd.f32 %v784_v42, %v354_v8 }
 0x133   :  { %441 = vst.msk [vmem:[%s967_s5 + $0x28] sm:$0xff] %vm435_vm1, %v355_v10  ;;  %401 = vmatmul.f32.gmra.mxu2 %v291_v9 }
 0x138   :  { %v357_v13 = vpop.f32.mrf.mxu1 }
 0x139   :  { %v358_v15 = vadd.f32 %v784_v42, %v357_v13 }
 0x13b   :  { %442 = vst.msk [vmem:[%s967_s5 + $0x30] sm:$0xff] %vm435_vm1, %v358_v15  ;;  %404 = vmatmul.f32.gmra.mxu2 %v292_v14 }
 0x140   :  { %v360_v18 = vpop.f32.mrf.mxu1 }
 0x141   :  { %v361_v20 = vadd.f32 %v784_v42, %v360_v18 }
 0x143   :  { %443 = vst.msk [vmem:[%s967_s5 + $0x38] sm:$0xff] %vm435_vm1, %v361_v20  ;;  %407 = vmatmul.f32.gmra.mxu2 %v293_v19 }
 0x148   :  { %v363_v24 = vpop.f32.mrf.mxu1 }
 0x149   :  { %v364_v26 = vadd.f32 %v784_v42, %v363_v24 }
 0x14b   :  { %444 = vst.msk [vmem:[%s967_s5 + $0x40] sm:$0xff] %vm435_vm1, %v364_v26  ;;  %410 = vmatmul.f32.gmra.mxu2 %v294_v25 }
 0x150   :  { %v366_v31 = vpop.f32.mrf.mxu1 }
 0x151   :  { %v367_v33 = vadd.f32 %v784_v42, %v366_v31 }
 0x153   :  { %445 = vst.msk [vmem:[%s967_s5 + $0x48] sm:$0xff] %vm435_vm1, %v367_v33  ;;  %413 = vmatmul.f32.gmra.mxu2 %v295_v32 }
 0x158   :  { %v369_v36 = vpop.f32.mrf.mxu1 }
 0x159   :  { %v370_v38 = vadd.f32 %v784_v42, %v369_v36 }
 0x15b   :  { %446 = vst.msk [vmem:[%s967_s5 + $0x50] sm:$0xff] %vm435_vm1, %v370_v38  ;;  %416 = vmatmul.f32.gmra.mxu2 %v296_v37 }
 0x160   :  { %v372_v40 = vpop.f32.mrf.mxu1 }
 0x161   :  { %v373_v44 = vadd.f32 %v784_v42, %v372_v40 }
 0x163   :  { %447 = vst.msk [vmem:[%s967_s5 + $0x58] sm:$0xff] %vm435_vm1, %v373_v44  ;;  %419 = vmatmul.f32.gmra.mxu2 %v297_v43 }
 0x168   :  { %v375_v46 = vpop.f32.mrf.mxu1 }
 0x169   :  { %v376_v48 = vadd.f32 %v784_v42, %v375_v46 }
 0x16b   :  { %448 = vst.msk [vmem:[%s967_s5 + $0x60] sm:$0xff] %vm435_vm1, %v376_v48  ;;  %422 = vmatmul.f32.gmra.mxu2 %v298_v47 }
 0x170   :  { %v378_v50 = vpop.f32.mrf.mxu1 }
 0x171   :  { %v379_v52 = vadd.f32 %v784_v42, %v378_v50 }
 0x173   :  { %449 = vst.msk [vmem:[%s967_s5 + $0x68] sm:$0xff] %vm435_vm1, %v379_v52  ;;  %425 = vmatmul.f32.gmra.mxu2 %v299_v51 }
 0x176   :  { %v429_v9 = vpop.f32.mrf.mxu3 }
 0x177   :  { %v430_v11 = vadd.f32 %v784_v42, %v429_v9 }
 0x178   :  { %v381_v53 = vpop.f32.mrf.mxu1 }
 0x179   :  { %v382_v54 = vadd.f32 %v784_v42, %v381_v53  ;;  %466 = vst.msk [vmem:[%s967_s5 + $0xf0] sm:$0xff] %vm435_vm1, %v430_v11 }
 0x17b   :  { %450 = vst.msk [vmem:[%s967_s5 + $0x70] sm:$0xff] %vm435_vm1, %v382_v54 }
 0x17e   :  { %v432_v13 = vpop.f32.mrf.mxu3 }
 0x17f   :  { %v433_v15 = vadd.f32 %v784_v42, %v432_v13 }
 0x181   :  { %467 = vst.msk [vmem:[%s967_s5 + $0xf8] sm:$0xff] %vm435_vm1, %v433_v15 }
 0x186   :  { %v384_v55 = vpop.f32.mrf.mxu2 }
 0x187   :  { %v385_v41 = vadd.f32 %v784_v42, %v384_v55 }
 0x189   :  { %451 = vst.msk [vmem:[%s967_s5 + $0x78] sm:$0xff] %vm435_vm1, %v385_v41 }
 0x18e   :  { %v387_v56 = vpop.f32.mrf.mxu2 }
 0x18f   :  { %v388_v57 = vadd.f32 %v784_v42, %v387_v56 }
 0x191   :  { %452 = vst.msk [vmem:[%s967_s5 + $0x80] sm:$0xff] %vm435_vm1, %v388_v57 }
 0x196   :  { %v390_v58 = vpop.f32.mrf.mxu2 }
 0x197   :  { %v391_v59 = vadd.f32 %v784_v42, %v390_v58 }
 0x199   :  { %453 = vst.msk [vmem:[%s967_s5 + $0x88] sm:$0xff] %vm435_vm1, %v391_v59 }
 0x19e   :  { %v393_v60 = vpop.f32.mrf.mxu2 }
 0x19f   :  { %v394_v61 = vadd.f32 %v784_v42, %v393_v60 }
 0x1a1   :  { %454 = vst.msk [vmem:[%s967_s5 + $0x90] sm:$0xff] %vm435_vm1, %v394_v61 }
 0x1a6   :  { %v396_v62 = vpop.f32.mrf.mxu2 }
 0x1a7   :  { %v397_v63 = vadd.f32 %v784_v42, %v396_v62 }
 0x1a9   :  { %455 = vst.msk [vmem:[%s967_s5 + $0x98] sm:$0xff] %vm435_vm1, %v397_v63 }
 0x1ae   :  { %v399_v0 = vpop.f32.mrf.mxu2 }
 0x1af   :  { %v400_v1 = vadd.f32 %v784_v42, %v399_v0 }
 0x1b1   :  { %456 = vst.msk [vmem:[%s967_s5 + $0xa0] sm:$0xff] %vm435_vm1, %v400_v1 }
 0x1b6   :  { %v402_v2 = vpop.f32.mrf.mxu2 }
 0x1b7   :  { %v403_v3 = vadd.f32 %v784_v42, %v402_v2 }
 0x1b9   :  { %457 = vst.msk [vmem:[%s967_s5 + $0xa8] sm:$0xff] %vm435_vm1, %v403_v3 }
 0x1be   :  { %v405_v4 = vpop.f32.mrf.mxu2 }
 0x1bf   :  { %v406_v5 = vadd.f32 %v784_v42, %v405_v4 }
 0x1c1   :  { %458 = vst.msk [vmem:[%s967_s5 + $0xb0] sm:$0xff] %vm435_vm1, %v406_v5 }
 0x1c6   :  { %v408_v6 = vpop.f32.mrf.mxu2 }
 0x1c7   :  { %v409_v7 = vadd.f32 %v784_v42, %v408_v6 }
 0x1c9   :  { %459 = vst.msk [vmem:[%s967_s5 + $0xb8] sm:$0xff] %vm435_vm1, %v409_v7 }
 0x1ce   :  { %v411_v8 = vpop.f32.mrf.mxu2 }
 0x1cf   :  { %v412_v10 = vadd.f32 %v784_v42, %v411_v8 }
 0x1d1   :  { %460 = vst.msk [vmem:[%s967_s5 + $0xc0] sm:$0xff] %vm435_vm1, %v412_v10 }
 0x1d6   :  { %v414_v12 = vpop.f32.mrf.mxu2 }
 0x1d7   :  { %v415_v14 = vadd.f32 %v784_v42, %v414_v12 }
 0x1d9   :  { %461 = vst.msk [vmem:[%s967_s5 + $0xc8] sm:$0xff] %vm435_vm1, %v415_v14 }
 0x1de   :  { %v417_v16 = vpop.f32.mrf.mxu2 }
 0x1df   :  { %v418_v17 = vadd.f32 %v784_v42, %v417_v16 }
 0x1e1   :  { %462 = vst.msk [vmem:[%s967_s5 + $0xd0] sm:$0xff] %vm435_vm1, %v418_v17 }
 0x1e6   :  { %v420_v18 = vpop.f32.mrf.mxu2 }
 0x1e7   :  { %v421_v19 = vadd.f32 %v784_v42, %v420_v18 }
 0x1e9   :  { %463 = vst.msk [vmem:[%s967_s5 + $0xd8] sm:$0xff] %vm435_vm1, %v421_v19 }
 0x1ee   :  { %v423_v20 = vpop.f32.mrf.mxu2 }
 0x1ef   :  { %v424_v21 = vadd.f32 %v784_v42, %v423_v20 }
 0x1f1   :  { %464 = vst.msk [vmem:[%s967_s5 + $0xe0] sm:$0xff] %vm435_vm1, %v424_v21 }
 0x1f6   :  { %v426_v22 = vpop.f32.mrf.mxu2 }
 0x1f7   :  { %v427_v23 = vadd.f32 %v784_v42, %v426_v22 }
 0x1f9   :  { %465 = vst.msk [vmem:[%s967_s5 + $0xe8] sm:$0xff] %vm435_vm1, %v427_v23 }

</bundles_post_ra>
